<compile_context>
chip_gen: v5e
topology: v5e:2x2
jax: 0.10.0
libtpu: 0.0.40
codegen_flags: <defaults>
</compile_context>

<pallas_src>
import functools

import jax
import jax.numpy as jnp
from jax.experimental import pallas as pl
from jax.experimental.pallas import tpu as pltpu

_LANES = 128  # batch values packed per output vreg row


def _round_up(x: int, m: int) -> int:
    return (x + m - 1) // m * m


def _value_net_kernel(x_ref, w1_ref, w2_ref, aux_ref, o_ref, *, fc1, fc2):
    """Fused MLP: relu(x@W1+b1) -> relu(.@W2+b2) -> lane-reduced value head."""
    x = x_ref[...]                       # (TB, D_in) f32

    b1 = aux_ref[0:1, 0:fc1]             # (1, fc1)
    b2 = aux_ref[1:2, 0:fc2]             # (1, fc2)
    wv = aux_ref[2:3, 0:fc2]             # (1, fc2)  value-head weight as a row
    bv = aux_ref[3:4, 0:1]               # (1, 1)

    # fc1 + relu (MXU, f32 accumulate)
    h1 = jnp.dot(x, w1_ref[...], preferred_element_type=jnp.float32) + b1
    h1 = jnp.maximum(h1, 0.0)

    # fc2 + relu (MXU, f32 accumulate)
    h2 = jnp.dot(h1, w2_ref[...], preferred_element_type=jnp.float32) + b2
    h2 = jnp.maximum(h2, 0.0)

    # Value head: output width is 1, so an MXU pass would waste 127+ lanes and
    # pay the result-FIFO drain.  Use the otherwise-idle VPU (multiply) + XLU
    # (lane reduction) instead.
    v = jnp.sum(h2 * wv, axis=-1, keepdims=True) + bv            # (TB, 1)

    # Lane-packed store: 128 batch values per output row -> one unmasked vst
    # per vreg row and minimal HBM writeback.  (TB is a multiple of 128.)
    o_ref[...] = v.reshape(o_ref.shape).astype(o_ref.dtype)


def pack_value_network_params(w1, b1, w2, b2, wv, bv):
    """Call ONCE at init (off the hot path).

    Packs b1, b2, wv^T, bv into one small [4, max(fc1, fc2)] aux buffer so the
    kernel needs only 4 input DMAs.  Returns (w1, w2, aux)."""
    fc1 = w1.shape[1]
    fc2 = w2.shape[1]
    aw = max(fc1, fc2)
    aux = jnp.zeros((4, aw), jnp.float32)
    aux = aux.at[0, :fc1].set(b1.reshape(fc1).astype(jnp.float32))
    aux = aux.at[1, :fc2].set(b2.reshape(fc2).astype(jnp.float32))
    aux = aux.at[2, :fc2].set(wv.reshape(fc2).astype(jnp.float32))
    aux = aux.at[3, 0].set(bv.reshape(()).astype(jnp.float32))
    return (w1.astype(jnp.float32), w2.astype(jnp.float32), aux)


def value_network_forward(state, packed_params, *, block_b: int = 1024,
                          min_tiles: int = 1):
    """state: [B, D_in] f32.  packed_params = (w1, w2, aux) from
    pack_value_network_params (weights as [in_features, out_features]).
    Returns [B, 1].

    block_b: batch tile cap (rounded to 128; per-tile VMEM ~1 KB/row, so 1024
             is well inside every generation's default scoped VMEM; raise
             vmem_limit_bytes if you push it past ~4K rows on v5e/v7x).
    min_tiles: set to 2 on v7x so the "parallel" grid axis gives each of the
             two TensorCores a tile; leave at 1 on v5e/v6e (single TC)."""
    w1, w2, aux = packed_params
    B, d_in = state.shape
    fc1 = w1.shape[1]
    fc2 = w2.shape[1]

    # --- batch tiling (tile multiple of 128 for the lane-packed output) ------
    bp0 = _round_up(B, _LANES)
    tb_cap = max(_LANES, _round_up(block_b, _LANES))
    if min_tiles > 1:
        tb_cap = min(tb_cap,
                     max(_LANES, _round_up(pl.cdiv(bp0, min_tiles), _LANES)))
    if tb_cap >= bp0:
        tb = bp0                               # single tile: block == full array
    else:
        # multi-tile: output block rows = tb//128 must be a multiple of 8
        tb = max(8 * _LANES, _round_up(tb_cap, 8 * _LANES))
    bp = _round_up(bp0, tb)
    if bp != B:                                # skip the pad copy when possible
        state = jnp.pad(state, ((0, bp - B), (0, 0)))
    num_tiles = bp // tb

    kernel = functools.partial(_value_net_kernel, fc1=fc1, fc2=fc2)
    out_shape = jax.ShapeDtypeStruct((bp // _LANES, _LANES), jnp.float32)

    if num_tiles == 1:
        # Small / medium batch: single invocation, no grid-step overhead.
        out = pl.pallas_call(
            kernel,
            out_shape=out_shape,
            grid=(),
            in_specs=[
                pl.BlockSpec(state.shape, lambda: (0, 0)),
                pl.BlockSpec(w1.shape, lambda: (0, 0)),
                pl.BlockSpec(w2.shape, lambda: (0, 0)),
                pl.BlockSpec(aux.shape, lambda: (0, 0)),
            ],
            out_specs=pl.BlockSpec((bp // _LANES, _LANES), lambda: (0, 0)),
        )(state, w1, w2, aux)
    else:
        # Large batch: tile over batch; weights/aux stay resident via constant
        # index_maps; "parallel" lets v7x's two TensorCores split the grid.
        out = pl.pallas_call(
            kernel,
            out_shape=out_shape,
            grid=(num_tiles,),
            in_specs=[
                pl.BlockSpec((tb, d_in), lambda i: (i, 0)),
                pl.BlockSpec(w1.shape, lambda i: (0, 0)),
                pl.BlockSpec(w2.shape, lambda i: (0, 0)),
                pl.BlockSpec(aux.shape, lambda i: (0, 0)),
            ],
            out_specs=pl.BlockSpec((tb // _LANES, _LANES), lambda i: (i, 0)),
            compiler_params=pltpu.CompilerParams(
                dimension_semantics=("parallel",)),
        )(state, w1, w2, aux)

    # Row-major un-flatten of the lane-packed output is layout-preserving.
    return out.reshape(bp, 1)[:B]


def init_value_network_params(key, input_dims, fc1_dims, fc2_dims):
    """nn.Linear default init: U(-1/sqrt(fan_in), 1/sqrt(fan_in)).
    Weights stored as [in_features, out_features]; biases as [1, out_features]."""
    ks = jax.random.split(key, 6)

    def linear(kw, kb, fan_in, fan_out):
        bound = 1.0 / jnp.sqrt(jnp.float32(fan_in))
        w = jax.random.uniform(kw, (fan_in, fan_out), jnp.float32, -bound, bound)
        b = jax.random.uniform(kb, (1, fan_out), jnp.float32, -bound, bound)
        return w, b

    w1, b1 = linear(ks[0], ks[1], input_dims, fc1_dims)
    w2, b2 = linear(ks[2], ks[3], fc1_dims, fc2_dims)
    wv, bv = linear(ks[4], ks[5], fc2_dims, 1)
    return (w1, b1, w2, b2, wv, bv)


if __name__ == "__main__":
    # Shapes consistent with ValueNetwork(alpha, input_dims=[8], fc1_dims=32, fc2_dims=32)
    B, D_IN, FC1, FC2 = 8, 8, 32, 32

    key = jax.random.PRNGKey(0)
    k_params, k_state = jax.random.split(key)

    raw = init_value_network_params(k_params, D_IN, FC1, FC2)
    w1, b1, w2, b2, wv, bv = raw
    packed = pack_value_network_params(*raw)   # hoisted off the per-call path

    def ref_fwd(x):
        h = jnp.maximum(x @ w1 + b1, 0.0)
        h = jnp.maximum(h @ w2 + b2, 0.0)
        return h @ wv + bv

    # Small batch (grid=() path; B padded to one 128-row tile).
    state = jax.random.normal(k_state, (B, D_IN), dtype=jnp.float32)
    v = jax.block_until_ready(value_network_forward(state, packed))
    assert v.shape == (B, 1)
    assert jnp.allclose(v, ref_fwd(state), atol=1e-5, rtol=1e-5)

    # Non-multiple-of-128 batch, still single big tile.
    big_state = jax.random.normal(jax.random.PRNGKey(1), (1000, D_IN), jnp.float32)
    v_big = jax.block_until_ready(value_network_forward(big_state, packed))
    assert v_big.shape == (1000, 1)
    assert jnp.allclose(v_big, ref_fwd(big_state), atol=1e-4, rtol=1e-4)

    # Batch large enough for the tiled "parallel" grid path (4 tiles of 1024).
    huge_state = jax.random.normal(jax.random.PRNGKey(2), (4096, D_IN), jnp.float32)
    v_huge = jax.block_until_ready(
        value_network_forward(huge_state, packed, block_b=1024))
    assert v_huge.shape == (4096, 1)
    assert jnp.allclose(v_huge, ref_fwd(huge_state), atol=1e-4, rtol=1e-4)

    print("KERNEL_OK")
</pallas_src>

<mosaic_0001>
module attributes {stable_mosaic.version = 11 : i64} {
  func.func @_value_net_kernel(%arg0: memref<128x8xf32, #tpu.memory_space<vmem>>, %arg1: memref<8x32xf32, #tpu.memory_space<vmem>>, %arg2: memref<32x32xf32, #tpu.memory_space<vmem>>, %arg3: memref<4x32xf32, #tpu.memory_space<vmem>>, %arg4: memref<1x128xf32, #tpu.memory_space<vmem>>) attributes {dimension_semantics = [], scalar_prefetch = 0 : i64, scratch_operands = 0 : i64, tpu.core_type = #tpu.core_type<tc>} {
    %c0 = arith.constant 0 : index
    %c0_0 = arith.constant 0 : index
    %0 = vector.load %arg0[%c0, %c0_0] : memref<128x8xf32, #tpu.memory_space<vmem>>, vector<128x8xf32>
    %c0_1 = arith.constant 0 : index
    %c0_2 = arith.constant 0 : index
    %1 = vector.load %arg3[%c0_1, %c0_2] : memref<4x32xf32, #tpu.memory_space<vmem>>, vector<1x32xf32>
    %c1 = arith.constant 1 : index
    %c0_3 = arith.constant 0 : index
    %2 = vector.load %arg3[%c1, %c0_3] : memref<4x32xf32, #tpu.memory_space<vmem>>, vector<1x32xf32>
    %c2 = arith.constant 2 : index
    %c0_4 = arith.constant 0 : index
    %3 = vector.load %arg3[%c2, %c0_4] : memref<4x32xf32, #tpu.memory_space<vmem>>, vector<1x32xf32>
    %c3 = arith.constant 3 : index
    %c0_5 = arith.constant 0 : index
    %4 = vector.load %arg3[%c3, %c0_5] : memref<4x32xf32, #tpu.memory_space<vmem>>, vector<1x1xf32>
    %c0_6 = arith.constant 0 : index
    %c0_7 = arith.constant 0 : index
    %5 = vector.load %arg1[%c0_6, %c0_7] : memref<8x32xf32, #tpu.memory_space<vmem>>, vector<8x32xf32>
    %cst = arith.constant dense<0.000000e+00> : vector<128x32xf32>
    %6 = tpu.matmul %0, %5, %cst {dimension_numbers = #tpu.dot_dimension_numbers<[1], [0], [0], [1], [0, 0, 1, 1], [], []>} : vector<128x8xf32>, vector<8x32xf32>, vector<128x32xf32> -> vector<128x32xf32>
    %7 = vector.broadcast %1 : vector<1x32xf32> to vector<128x32xf32>
    %8 = arith.addf %6, %7 : vector<128x32xf32>
    %cst_8 = arith.constant 0.000000e+00 : f32
    %9 = vector.broadcast %cst_8 : f32 to vector<128x32xf32>
    %10 = arith.maximumf %8, %9 : vector<128x32xf32>
    %c0_9 = arith.constant 0 : index
    %c0_10 = arith.constant 0 : index
    %11 = vector.load %arg2[%c0_9, %c0_10] : memref<32x32xf32, #tpu.memory_space<vmem>>, vector<32x32xf32>
    %cst_11 = arith.constant dense<0.000000e+00> : vector<128x32xf32>
    %12 = tpu.matmul %10, %11, %cst_11 {dimension_numbers = #tpu.dot_dimension_numbers<[1], [0], [0], [1], [0, 0, 1, 1], [], []>} : vector<128x32xf32>, vector<32x32xf32>, vector<128x32xf32> -> vector<128x32xf32>
    %13 = vector.broadcast %2 : vector<1x32xf32> to vector<128x32xf32>
    %14 = arith.addf %12, %13 : vector<128x32xf32>
    %cst_12 = arith.constant 0.000000e+00 : f32
    %15 = vector.broadcast %cst_12 : f32 to vector<128x32xf32>
    %16 = arith.maximumf %14, %15 : vector<128x32xf32>
    %17 = vector.broadcast %3 : vector<1x32xf32> to vector<128x32xf32>
    %18 = arith.mulf %16, %17 : vector<128x32xf32>
    %cst_13 = arith.constant dense<0.000000e+00> : vector<128xf32>
    %19 = vector.multi_reduction <add>, %18, %cst_13 [1] : vector<128x32xf32> to vector<128xf32>
    %20 = vector.shape_cast %19 : vector<128xf32> to vector<128x1xf32>
    %21 = vector.broadcast %4 : vector<1x1xf32> to vector<128x1xf32>
    %22 = arith.addf %20, %21 : vector<128x1xf32>
    %23 = vector.shape_cast %22 : vector<128x1xf32> to vector<1x128xf32>
    %c0_14 = arith.constant 0 : index
    %c0_15 = arith.constant 0 : index
    %24 = vector.load %arg4[%c0_14, %c0_15] : memref<1x128xf32, #tpu.memory_space<vmem>>, vector<1x128xf32>
    tpu.vector_store %arg4[%c0_14, %c0_15], %23 {strides = array<i32>} : memref<1x128xf32, #tpu.memory_space<vmem>>, vector<1x128xf32>,
    return
  }
}

</mosaic_0001>

<bundles_post_ra>
// kernel: tpu_custom_call.1
= control target key start
LH: loop header
LB: loop body
LE: loop exit
PB: predicated region body
PF: predicated region fallthrough
CT: control target
= control target key end

     0   :  { %vm40_vm0 = vcmask 64512   ;;  %s829_s0 = inlined_call_operand.vmem [shape: f32[128,8], index: 0, kind: input, shape index: {}]   ;;  %s830_s1 = inlined_call_operand.vmem [shape: f32[8,32], index: 1, kind: input, shape index: {}]   ;;  %s831_s2 = inlined_call_operand.vmem [shape: f32[32,32], index: 2, kind: input, shape index: {}]   ;;  %s832_s3 = inlined_call_operand.vmem [shape: f32[4,32], index: 3, kind: input, shape index: {}]   ;;  %s833_s4 = inlined_call_operand.hbm [shape: f32[1,128], index: 4, kind: output, shape index: {}]  }
   0x1   :  { %v38_v0 = vld [vmem:[%s830_s1] sm:$0xff] }
   0x2   :  { %v18_v1 = vld [vmem:[%s829_s0] sm:$0xff]  ;;  %104 = vmatpush.msra.mxu0 %v38_v0  ;;  %564 = vmatpush.msra.mxu3 %v38_v0 }
   0x3   :  { %532 = vmatmul.msk.f32.vlgmr.msra.gmra.mxu0 %vm40_vm0, %v18_v1 }
   0x4   :  { %9 = vsyncpa [#allocation3], 0  ;;  %v19_v2 = vld [vmem:[%s829_s0 + $0x8] sm:$0xff]  ;;  %v20_v3 = vld [vmem:[%s829_s0 + $0x10] sm:$0xff]  ;;  %vm175_vm1 = vcmask 261120   ;;  %vm456_vm2 = vcmask 130112  }
   0x5   :  { %v21_v4 = vld [vmem:[%s829_s0 + $0x18] sm:$0xff]  ;;  %v22_v5 = vld [vmem:[%s829_s0 + $0x20] sm:$0xff]  ;;  %v27_v6 = vld [vmem:[%s829_s0 + $0x48] sm:$0xff]  ;;  %vm460_vm3 = vcmask 195712   ;;  %vm464_vm4 = vcmask 261312   ;;  %vm468_vm5 = vcmask 326912  }
   0x6   :  { %541 = vmatmul.msk.f32.vlgmr.msra.gmra.mxu3 %vm40_vm0, %v27_v6  ;;  %v23_v7 = vld [vmem:[%s829_s0 + $0x28] sm:$0xff]  ;;  %v28_v8 = vld [vmem:[%s829_s0 + $0x50] sm:$0xff]  ;;  %v29_v10 = vld [vmem:[%s829_s0 + $0x58] sm:$0xff]  ;;  %vm472_vm6 = vcmask 392512   ;;  %vm476_vm7 = vcmask 458112   ;;  %vm480_vm8 = vcmask 523712  }
   0x7   :  { %v24_v9 = vld [vmem:[%s829_s0 + $0x30] sm:$0xff]  ;;  %v173_v11 = vld [vmem:[%s831_s2 + $0x18] sm:$0xff]  ;;  %v30_v13 = vld [vmem:[%s829_s0 + $0x60] sm:$0xff]  ;;  %vm484_vm9 = vcmask 589312   ;;  %vm488_vm10 = vcmask 654912   ;;  %vm492_vm11 = vcmask 720512  }
   0x8   :  { %236 = vmatpush.msra.mxu1 %v173_v11  ;;  %565 = vmatpush.msra.mxu2 %v173_v11  ;;  %v25_v12 = vld [vmem:[%s829_s0 + $0x38] sm:$0xff]  ;;  %v26_v14 = vld [vmem:[%s829_s0 + $0x40] sm:$0xff]  ;;  %v31_v15 = vld [vmem:[%s829_s0 + $0x68] sm:$0xff]  ;;  %vm496_vm12 = vcmask 786112   ;;  %vm500_vm13 = vcmask 851712   ;;  %vm504_vm14 = vcmask 917312  }
   0x9   :  { %v32_v16 = vld [vmem:[%s829_s0 + $0x70] sm:$0xff]  ;;  %v33_v17 = vld [vmem:[%s829_s0 + $0x78] sm:$0xff]  ;;  %v171_v19 = vld [vmem:[%s831_s2 + $0x8] sm:$0xff]  ;;  %vm508_vm15 = vcmask 982912   ;;  %s523_s12 = sshll.u32 %s833_s4, 4  ;;  %s524_s12 = int_to_ptr.hbm [resolvable:$true] %s523_s12 }
   0xa   :  { %v172_v18 = vld [vmem:[%s831_s2 + $0x10] sm:$0xff]  ;;  %v170_v20 = vld [vmem:[%s831_s2] sm:$0xff] }
   0xb   :  { %533 = vmatmul.msk.f32.gmra.mxu0 %vm40_vm0, %v19_v2  ;;  %237 = vmatpush.msra.mxu1 %v172_v18  ;;  %v713_v21 = vld [vmem:[%s832_s3] ss:$0 sm:$0xff]  ;;  %v750_v6 = vld [vmem:[%s832_s3 + $0x1] ss:$0 sm:$0xff] }
   0xc   :  { %566 = vmatpush.msra.mxu2 %v172_v18 }
   0xd   :  { %238 = vmatpush.msra.mxu1 %v171_v19 }
   0xe   :  { %542 = vmatmul.msk.f32.gmra.mxu3 %vm40_vm0, %v28_v8  ;;  %567 = vmatpush.msra.mxu2 %v171_v19 }
   0xf   :  { %239 = vmatpush.msra.mxu1 %v170_v20 }
  0x10   :  { %568 = vmatpush.msra.mxu2 %v170_v20 }
  0x13   :  { %534 = vmatmul.msk.f32.gmra.mxu0 %vm40_vm0, %v20_v3 }
  0x16   :  { %543 = vmatmul.msk.f32.gmra.mxu3 %vm40_vm0, %v29_v10 }
  0x1b   :  { %535 = vmatmul.msk.f32.gmra.mxu0 %vm40_vm0, %v21_v4 }
  0x1e   :  { %544 = vmatmul.msk.f32.gmra.mxu3 %vm40_vm0, %v30_v13 }
  0x23   :  { %536 = vmatmul.msk.f32.gmra.mxu0 %vm40_vm0, %v22_v5 }
  0x26   :  { %545 = vmatmul.msk.f32.gmra.mxu3 %vm40_vm0, %v31_v15 }
  0x2b   :  { %537 = vmatmul.msk.f32.gmra.mxu0 %vm40_vm0, %v23_v7 }
  0x2e   :  { %546 = vmatmul.msk.f32.gmra.mxu3 %vm40_vm0, %v32_v16 }
  0x33   :  { %538 = vmatmul.msk.f32.gmra.mxu0 %vm40_vm0, %v24_v9  ;;  %v756_v9 = vld [vmem:[%s832_s3 + $0x2] ss:$0 sm:$0xff] }
  0x36   :  { %547 = vmatmul.msk.f32.gmra.mxu3 %vm40_vm0, %v33_v17 }
  0x3b   :  { %539 = vmatmul.msk.f32.gmra.mxu0 %vm40_vm0, %v25_v12 }
  0x43   :  { %540 = vmatmul.msk.f32.gmra.mxu0 %vm40_vm0, %v26_v14  ;;  %vm512_vm0 = vcmask 1048512  }
  0x80   :  { %v106_v22 = vpop.f32.mrf.mxu0 }
  0x81   :  { %v107_v23 = vadd.f32 %v713_v21, %v106_v22 }
  0x83   :  { %v154_v24 = vmax.f32 %v107_v23, 0.0 }
  0x85   :  { %548 = vmatmul.msk.f32.vlgmr.msra.gmra.mxu1 %vm175_vm1, %v154_v24 }
  0x88   :  { %v109_v25 = vpop.f32.mrf.mxu0 }
  0x89   :  { %v110_v26 = vadd.f32 %v713_v21, %v109_v25  ;;  %v133_v43 = vpop.f32.mrf.mxu3 }
  0x8a   :  { %v134_v51 = vadd.f32 %v713_v21, %v133_v43 }
  0x8b   :  { %v155_v27 = vmax.f32 %v110_v26, 0.0 }
  0x8c   :  { %v163_v52 = vmax.f32 %v134_v51, 0.0 }
  0x8d   :  { %549 = vmatmul.msk.f32.gmra.mxu1 %vm175_vm1, %v155_v27 }
  0x90   :  { %v112_v28 = vpop.f32.mrf.mxu0 }
  0x91   :  { %v113_v29 = vadd.f32 %v713_v21, %v112_v28  ;;  %v136_v48 = vpop.f32.mrf.mxu3 }
  0x92   :  { %v137_v54 = vadd.f32 %v713_v21, %v136_v48 }
  0x93   :  { %v156_v30 = vmax.f32 %v113_v29, 0.0 }
  0x94   :  { %v164_v55 = vmax.f32 %v137_v54, 0.0 }
  0x95   :  { %550 = vmatmul.msk.f32.gmra.mxu1 %vm175_vm1, %v156_v30 }
  0x98   :  { %v115_v31 = vpop.f32.mrf.mxu0 }
  0x99   :  { %v116_v32 = vadd.f32 %v713_v21, %v115_v31  ;;  %v139_v53 = vpop.f32.mrf.mxu3 }
  0x9a   :  { %v140_v57 = vadd.f32 %v713_v21, %v139_v53 }
  0x9b   :  { %v157_v33 = vmax.f32 %v116_v32, 0.0 }
  0x9c   :  { %v165_v58 = vmax.f32 %v140_v57, 0.0 }
  0x9d   :  { %551 = vmatmul.msk.f32.gmra.mxu1 %vm175_vm1, %v157_v33 }
  0xa0   :  { %v118_v34 = vpop.f32.mrf.mxu0 }
  0xa1   :  { %v119_v35 = vadd.f32 %v713_v21, %v118_v34  ;;  %v142_v56 = vpop.f32.mrf.mxu3 }
  0xa2   :  { %v143_v59 = vadd.f32 %v713_v21, %v142_v56 }
  0xa3   :  { %v158_v36 = vmax.f32 %v119_v35, 0.0 }
  0xa4   :  { %v166_v61 = vmax.f32 %v143_v59, 0.0 }
  0xa5   :  { %552 = vmatmul.msk.f32.gmra.mxu1 %vm175_vm1, %v158_v36 }
  0xa8   :  { %v121_v37 = vpop.f32.mrf.mxu0 }
  0xa9   :  { %v122_v38 = vadd.f32 %v713_v21, %v121_v37  ;;  %v145_v60 = vpop.f32.mrf.mxu3 }
  0xaa   :  { %v146_v62 = vadd.f32 %v713_v21, %v145_v60 }
  0xab   :  { %v159_v39 = vmax.f32 %v122_v38, 0.0 }
  0xac   :  { %v167_v0 = vmax.f32 %v146_v62, 0.0 }
  0xad   :  { %553 = vmatmul.msk.f32.gmra.mxu1 %vm175_vm1, %v159_v39 }
  0xb0   :  { %v124_v40 = vpop.f32.mrf.mxu0 }
  0xb1   :  { %v125_v41 = vadd.f32 %v713_v21, %v124_v40  ;;  %v148_v63 = vpop.f32.mrf.mxu3 }
  0xb2   :  { %v149_v1 = vadd.f32 %v713_v21, %v148_v63 }
  0xb3   :  { %v160_v42 = vmax.f32 %v125_v41, 0.0 }
  0xb4   :  { %v168_v2 = vmax.f32 %v149_v1, 0.0 }
  0xb5   :  { %554 = vmatmul.msk.f32.gmra.mxu1 %vm175_vm1, %v160_v42 }
  0xb8   :  { %v127_v44 = vpop.f32.mrf.mxu0 }
  0xb9   :  { %v128_v45 = vadd.f32 %v713_v21, %v127_v44  ;;  %v151_v3 = vpop.f32.mrf.mxu3 }
  0xba   :  { %v152_v4 = vadd.f32 %v713_v21, %v151_v3 }
  0xbb   :  { %v161_v46 = vmax.f32 %v128_v45, 0.0 }
  0xbc   :  { %v169_v5 = vmax.f32 %v152_v4, 0.0 }
  0xbd   :  { %555 = vmatmul.msk.f32.gmra.mxu1 %vm175_vm1, %v161_v46 }
  0xc0   :  { %v130_v47 = vpop.f32.mrf.mxu0 }
  0xc1   :  { %v131_v49 = vadd.f32 %v713_v21, %v130_v47 }
  0xc3   :  { %v162_v50 = vmax.f32 %v131_v49, 0.0 }
  0xc5   :  { %556 = vmatmul.msk.f32.vlgmr.msra.gmra.mxu2 %vm175_vm1, %v162_v50 }
  0xcd   :  { %557 = vmatmul.msk.f32.gmra.mxu2 %vm175_vm1, %v163_v52 }
  0xd5   :  { %558 = vmatmul.msk.f32.gmra.mxu2 %vm175_vm1, %v164_v55 }
  0xdd   :  { %559 = vmatmul.msk.f32.gmra.mxu2 %vm175_vm1, %v165_v58 }
  0xe5   :  { %560 = vmatmul.msk.f32.gmra.mxu2 %vm175_vm1, %v166_v61 }
  0xed   :  { %561 = vmatmul.msk.f32.gmra.mxu2 %vm175_vm1, %v167_v0 }
  0xf5   :  { %562 = vmatmul.msk.f32.gmra.mxu2 %vm175_vm1, %v168_v2 }
  0xfd   :  { %563 = vmatmul.msk.f32.gmra.mxu2 %vm175_vm1, %v169_v5 }
 0x102   :  { %v241_v7 = vpop.f32.mrf.mxu1 }
 0x103   :  { %v242_v8 = vadd.f32 %v750_v6, %v241_v7 }
 0x105   :  { %v289_v10 = vmax.f32 %v242_v8, 0.0 }
 0x107   :  { %v306_v11 = vmul.f32 %v756_v9, %v289_v10 }
 0x109   :  { %v322_v12 = vsel %vm175_vm1, %v306_v11, 0.0  ;;  %v604_v11 = vmov 0  }
 0x10a   :  { %v244_v13 = vpop.f32.mrf.mxu1  ;;  %323 = vadd.xlane.f32.xlu0 %v322_v12  ;;  %571 = vset.pattern.permute.xlu1 %v604_v11 }
 0x10b   :  { %v245_v14 = vadd.f32 %v750_v6, %v244_v13  ;;  %572 = vset.pattern.permute.xlu2 %v604_v11  ;;  %573 = vset.pattern.permute.xlu0 %v604_v11 }
 0x10d   :  { %v290_v15 = vmax.f32 %v245_v14, 0.0 }
 0x10f   :  { %v307_v16 = vmul.f32 %v756_v9, %v290_v15 }
 0x111   :  { %v325_v17 = vsel %vm175_vm1, %v307_v16, 0.0 }
 0x112   :  { %v247_v18 = vpop.f32.mrf.mxu1  ;;  %326 = vadd.xlane.f32.xlu0 %v325_v17 }
 0x113   :  { %v248_v19 = vadd.f32 %v750_v6, %v247_v18 }
 0x115   :  { %v291_v20 = vmax.f32 %v248_v19, 0.0 }
 0x117   :  { %v308_v21 = vmul.f32 %v756_v9, %v291_v20 }
 0x119   :  { %v328_v22 = vsel %vm175_vm1, %v308_v21, 0.0 }
 0x11a   :  { %v250_v23 = vpop.f32.mrf.mxu1  ;;  %329 = vadd.xlane.f32.xlu1 %v328_v22 }
 0x11b   :  { %v251_v24 = vadd.f32 %v750_v6, %v250_v23 }
 0x11d   :  { %v292_v25 = vmax.f32 %v251_v24, 0.0 }
 0x11f   :  { %v309_v26 = vmul.f32 %v756_v9, %v292_v25 }
 0x121   :  { %v331_v27 = vsel %vm175_vm1, %v309_v26, 0.0 }
 0x122   :  { %v253_v28 = vpop.f32.mrf.mxu1  ;;  %332 = vadd.xlane.f32.xlu1 %v331_v27 }
 0x123   :  { %v254_v29 = vadd.f32 %v750_v6, %v253_v28  ;;  %v577_v28 = vld [vmem:[%s832_s3 + $0x3] ss:$0 sm:$0xff]  ;;  %s605_s3 = smov [#allocation2]  }
 0x124   :  { %s521_s9 = sshll.u32 %s605_s3, 4  ;;  %s522_s9 = int_to_ptr.vmem [resolvable:$true] %s521_s9 }
 0x125   :  { %v293_v30 = vmax.f32 %v254_v29, 0.0 }
 0x127   :  { %v310_v31 = vmul.f32 %v756_v9, %v293_v30 }
 0x129   :  { %v334_v32 = vsel %vm175_vm1, %v310_v31, 0.0 }
 0x12a   :  { %v256_v33 = vpop.f32.mrf.mxu1  ;;  %335 = vadd.xlane.f32.xlu2 %v334_v32 }
 0x12b   :  { %v257_v34 = vadd.f32 %v750_v6, %v256_v33 }
 0x12d   :  { %v294_v35 = vmax.f32 %v257_v34, 0.0 }
 0x12f   :  { %v311_v36 = vmul.f32 %v756_v9, %v294_v35 }
 0x131   :  { %v337_v37 = vsel %vm175_vm1, %v311_v36, 0.0 }
 0x132   :  { %v259_v38 = vpop.f32.mrf.mxu1  ;;  %338 = vadd.xlane.f32.xlu2 %v337_v37 }
 0x133   :  { %v260_v39 = vadd.f32 %v750_v6, %v259_v38 }
 0x135   :  { %v295_v40 = vmax.f32 %v260_v39, 0.0 }
 0x137   :  { %v312_v41 = vmul.f32 %v756_v9, %v295_v40 }
 0x139   :  { %v340_v42 = vsel %vm175_vm1, %v312_v41, 0.0 }
 0x13a   :  { %v262_v43 = vpop.f32.mrf.mxu1  ;;  %341 = vadd.xlane.f32.xlu0 %v340_v42 }
 0x13b   :  { %v263_v44 = vadd.f32 %v750_v6, %v262_v43 }
 0x13d   :  { %v296_v45 = vmax.f32 %v263_v44, 0.0 }
 0x13f   :  { %v313_v46 = vmul.f32 %v756_v9, %v296_v45 }
 0x141   :  { %v343_v47 = vsel %vm175_vm1, %v313_v46, 0.0 }
 0x142   :  { %344 = vadd.xlane.f32.xlu1 %v343_v47 }
 0x148   :  { %v265_v48 = vpop.f32.mrf.mxu2 }
 0x149   :  { %v266_v49 = vadd.f32 %v750_v6, %v265_v48 }
 0x14b   :  { %v297_v50 = vmax.f32 %v266_v49, 0.0 }
 0x14d   :  { %v314_v51 = vmul.f32 %v756_v9, %v297_v50 }
 0x14f   :  { %v346_v52 = vsel %vm175_vm1, %v314_v51, 0.0 }
 0x150   :  { %v268_v53 = vpop.f32.mrf.mxu2  ;;  %347 = vadd.xlane.f32.xlu2 %v346_v52 }
 0x151   :  { %v269_v54 = vadd.f32 %v750_v6, %v268_v53 }
 0x153   :  { %v298_v55 = vmax.f32 %v269_v54, 0.0 }
 0x155   :  { %v315_v56 = vmul.f32 %v756_v9, %v298_v55 }
 0x157   :  { %v349_v57 = vsel %vm175_vm1, %v315_v56, 0.0 }
 0x158   :  { %v271_v58 = vpop.f32.mrf.mxu2  ;;  %350 = vadd.xlane.f32.xlu0 %v349_v57 }
 0x159   :  { %v272_v59 = vadd.f32 %v750_v6, %v271_v58 }
 0x15b   :  { %v299_v60 = vmax.f32 %v272_v59, 0.0 }
 0x15d   :  { %v316_v61 = vmul.f32 %v756_v9, %v299_v60 }
 0x15f   :  { %v352_v62 = vsel %vm175_vm1, %v316_v61, 0.0 }
 0x160   :  { %v274_v63 = vpop.f32.mrf.mxu2  ;;  %353 = vadd.xlane.f32.xlu1 %v352_v62  ;;  %v451_v62 = vlaneseq }
 0x161   :  { %v275_v0 = vadd.f32 %v750_v6, %v274_v63 }
 0x162   :  { %v808_v63 = vand.u32 127, %v451_v62 }
 0x163   :  { %v300_v1 = vmax.f32 %v275_v0, 0.0 }
 0x164   :  { %v462_v11 = vadd.s32 4294967272, %v808_v63 }
 0x165   :  { %v317_v2 = vmul.f32 %v756_v9, %v300_v1 }
 0x167   :  { %v355_v3 = vsel %vm175_vm1, %v317_v2, 0.0  ;;  %v458_v2 = vadd.s32 4294967280, %v808_v63 }
 0x168   :  { %v277_v4 = vpop.f32.mrf.mxu2  ;;  %356 = vadd.xlane.f32.xlu2 %v355_v3  ;;  %v454_v3 = vadd.s32 4294967288, %v808_v63 }
 0x169   :  { %v278_v5 = vadd.f32 %v750_v6, %v277_v4 }
 0x16b   :  { %v301_v7 = vmax.f32 %v278_v5, 0.0 }
 0x16d   :  { %v318_v8 = vmul.f32 %v756_v9, %v301_v7 }
 0x16f   :  { %v358_v10 = vsel %vm175_vm1, %v318_v8, 0.0  ;;  %v466_v8 = vadd.s32 4294967264, %v808_v63 }
 0x170   :  { %v280_v12 = vpop.f32.mrf.mxu2  ;;  %359 = vadd.xlane.f32.xlu0 %v358_v10 }
 0x171   :  { %v281_v13 = vadd.f32 %v750_v6, %v280_v12 }
 0x173   :  { %v302_v14 = vmax.f32 %v281_v13, 0.0 }
 0x175   :  { %v319_v15 = vmul.f32 %v756_v9, %v302_v14 }
 0x177   :  { %v361_v16 = vsel %vm175_vm1, %v319_v15, 0.0 }
 0x178   :  { %v283_v17 = vpop.f32.mrf.mxu2  ;;  %362 = vadd.xlane.f32.xlu1 %v361_v16 }
 0x179   :  { %v284_v18 = vadd.f32 %v750_v6, %v283_v17  ;;  %v474_v17 = vadd.s32 4294967248, %v808_v63 }
 0x17b   :  { %v303_v19 = vmax.f32 %v284_v18, 0.0 }
 0x17d   :  { %v320_v20 = vmul.f32 %v756_v9, %v303_v19  ;;  %v324_v27 = vpop.xlane.xlu0 %323  ;;  %v470_v19 = vadd.s32 4294967256, %v808_v63 }
 0x17e   :  { %v371_v29 = vadd.f32 %v577_v28, %v324_v27  ;;  %v486_v27 = vadd.s32 4294967224, %v808_v63 }
 0x17f   :  { %v364_v21 = vsel %vm175_vm1, %v320_v20, 0.0 }
 0x180   :  { %v286_v22 = vpop.f32.mrf.mxu2  ;;  %365 = vadd.xlane.f32.xlu2 %v364_v21 }
 0x181   :  { %v287_v23 = vadd.f32 %v750_v6, %v286_v22 }
 0x183   :  { %v304_v24 = vmax.f32 %v287_v23, 0.0 }
 0x185   :  { %v321_v25 = vmul.f32 %v756_v9, %v304_v24  ;;  %v327_v31 = vpop.xlane.xlu0 %326  ;;  %v482_v24 = vadd.s32 4294967232, %v808_v63 }
 0x186   :  { %v372_v32 = vadd.f32 %v577_v28, %v327_v31 }
 0x187   :  { %v367_v26 = vsel %vm175_vm1, %v321_v25, 0.0 }
 0x188   :  { %368 = vadd.xlane.f32.xlu0 %v367_v26  ;;  %v478_v26 = vadd.s32 4294967240, %v808_v63 }
 0x18d   :  { %v330_v30 = vpop.xlane.xlu1 %329 }
 0x18e   :  { %v373_v33 = vadd.f32 %v577_v28, %v330_v30 }
 0x191   :  { %404 = vperm.xlu1 %571, %v371_v29  }
 0x195   :  { %v333_v34 = vpop.xlane.xlu1 %332 }
 0x196   :  { %v374_v35 = vadd.f32 %v577_v28, %v333_v34 }
 0x198   :  { %407 = vperm.xlu2 %572, %v372_v32  }
 0x19c   :  { %410 = vperm.xlu0 %573, %v373_v33  }
 0x19d   :  { %v336_v6 = vpop.xlane.xlu2 %335 }
 0x19e   :  { %v375_v9 = vadd.f32 %v577_v28, %v336_v6  ;;  %v494_v6 = vadd.s32 4294967208, %v808_v63 }
 0x1a0   :  { %416 = vperm.xlu1 %571, %v375_v9   ;;  %413 = vperm.xlu2 %572, %v374_v35   ;;  %v490_v35 = vadd.s32 4294967216, %v808_v63  ;;  %v498_v9 = vadd.s32 4294967200, %v808_v63 }
 0x1a5   :  { %v339_v36 = vpop.xlane.xlu2 %338 }
 0x1a6   :  { %v376_v37 = vadd.f32 %v577_v28, %v339_v36 }
 0x1a8   :  { %419 = vperm.xlu2 %572, %v376_v37  }
 0x1ad   :  { %v342_v38 = vpop.xlane.xlu0 %341 }
 0x1ae   :  { %v377_v39 = vadd.f32 %v577_v28, %v342_v38 }
 0x1b0   :  { %422 = vperm.xlu1 %571, %v377_v39  }
 0x1b5   :  { %v345_v40 = vpop.xlane.xlu1 %344 }
 0x1b6   :  { %v378_v41 = vadd.f32 %v577_v28, %v345_v40 }
 0x1b8   :  { %425 = vperm.xlu2 %572, %v378_v41  }
 0x1c3   :  { %v348_v42 = vpop.xlane.xlu2 %347 }
 0x1c4   :  { %v379_v43 = vadd.f32 %v577_v28, %v348_v42 }
 0x1c6   :  { %428 = vperm.xlu1 %571, %v379_v43   ;;  %v506_v43 = vadd.s32 4294967184, %v808_v63 }
 0x1cb   :  { %v351_v44 = vpop.xlane.xlu0 %350 }
 0x1cc   :  { %v380_v45 = vadd.f32 %v577_v28, %v351_v44  ;;  %v502_v44 = vadd.s32 4294967192, %v808_v63 }
 0x1ce   :  { %431 = vperm.xlu0 %573, %v380_v45  }
 0x1d3   :  { %v354_v46 = vpop.xlane.xlu1 %353 }
 0x1d4   :  { %v381_v47 = vadd.f32 %v577_v28, %v354_v46 }
 0x1d6   :  { %434 = vperm.xlu2 %572, %v381_v47  }
 0x1db   :  { %v357_v48 = vpop.xlane.xlu2 %356 }
 0x1dc   :  { %v382_v49 = vadd.f32 %v577_v28, %v357_v48 }
 0x1de   :  { %437 = vperm.xlu1 %571, %v382_v49   ;;  %v510_v49 = vadd.s32 4294967176, %v808_v63 }
 0x1e3   :  { %v360_v50 = vpop.xlane.xlu0 %359 }
 0x1e4   :  { %v383_v51 = vadd.f32 %v577_v28, %v360_v50 }
 0x1e6   :  { %440 = vperm.xlu0 %573, %v383_v51  }
 0x1eb   :  { %v363_v52 = vpop.xlane.xlu1 %362 }
 0x1ec   :  { %v384_v53 = vadd.f32 %v577_v28, %v363_v52 }
 0x1ee   :  { %443 = vperm.xlu2 %572, %v384_v53  }
 0x1f3   :  { %v366_v54 = vpop.xlane.xlu2 %365 }
 0x1f4   :  { %v385_v55 = vadd.f32 %v577_v28, %v366_v54 }
 0x1f6   :  { %446 = vperm.xlu1 %571, %v385_v55  }
 0x1fb   :  { %v369_v56 = vpop.xlane.xlu0 %368  ;;  %v408_v58 = vpop.permute.xlu2 %407 }
 0x1fc   :  { %v386_v57 = vadd.f32 %v577_v28, %v369_v56  ;;  %v455_v10 = vperm.slane %v408_v58, %v454_v3 }
 0x1fe   :  { %449 = vperm.xlu0 %573, %v386_v57  }
 0x203   :  { %v405_v59 = vpop.permute.xlu1 %404  ;;  %v414_v60 = vpop.permute.xlu2 %413 }
 0x204   :  { %v453_v5 = vperm.slane %v405_v59, %v808_v63  ;;  %v463_v18 = vperm.slane %v414_v60, %v462_v11 }
 0x206   :  { %v457_v12 = vsel %vm456_vm2, %v455_v10, %v453_v5 }
 0x20b   :  { %v420_v0 = vpop.permute.xlu2 %419 }
 0x20c   :  { %v471_v25 = vperm.slane %v420_v0, %v470_v19 }
 0x20e   :  { %v411_v4 = vpop.permute.xlu0 %410 }
 0x20f   :  { %v459_v7 = vperm.slane %v411_v4, %v458_v2 }
 0x211   :  { %v461_v14 = vsel %vm460_vm3, %v459_v7, %v457_v12 }
 0x212   :  { %v417_v61 = vpop.permute.xlu1 %416  ;;  %v465_v20 = vsel %vm464_vm4, %v463_v18, %v461_v14 }
 0x213   :  { %v467_v15 = vperm.slane %v417_v61, %v466_v8  ;;  %v426_v16 = vpop.permute.xlu2 %425 }
 0x214   :  { %v479_v33 = vperm.slane %v426_v16, %v478_v26 }
 0x215   :  { %v469_v22 = vsel %vm468_vm5, %v467_v15, %v465_v20 }
 0x216   :  { %v473_v28 = vsel %vm472_vm6, %v471_v25, %v469_v22 }
 0x222   :  { %v423_v1 = vpop.permute.xlu1 %422 }
 0x223   :  { %v475_v23 = vperm.slane %v423_v1, %v474_v17 }
 0x225   :  { %v477_v30 = vsel %vm476_vm7, %v475_v23, %v473_v28 }
 0x226   :  { %v481_v36 = vsel %vm480_vm8, %v479_v33, %v477_v30 }
 0x230   :  { %v435_v31 = vpop.permute.xlu2 %434 }
 0x231   :  { %v491_v41 = vperm.slane %v435_v31, %v490_v35 }
 0x238   :  { %v429_v13 = vpop.permute.xlu1 %428 }
 0x239   :  { %v483_v32 = vperm.slane %v429_v13, %v482_v24 }
 0x23b   :  { %v485_v38 = vsel %vm484_vm9, %v483_v32, %v481_v36 }
 0x240   :  { %v432_v21 = vpop.permute.xlu0 %431 }
 0x241   :  { %v487_v34 = vperm.slane %v432_v21, %v486_v27 }
 0x243   :  { %v489_v39 = vsel %vm488_vm10, %v487_v34, %v485_v38 }
 0x244   :  { %v493_v47 = vsel %vm492_vm11, %v491_v41, %v489_v39 }
 0x248   :  { %v444_v46 = vpop.permute.xlu2 %443 }
 0x249   :  { %v503_v52 = vperm.slane %v444_v46, %v502_v44 }
 0x250   :  { %v438_v29 = vpop.permute.xlu1 %437 }
 0x251   :  { %v495_v40 = vperm.slane %v438_v29, %v494_v6 }
 0x253   :  { %v497_v48 = vsel %vm496_vm12, %v495_v40, %v493_v47 }
 0x258   :  { %v441_v37 = vpop.permute.xlu0 %440 }
 0x259   :  { %v499_v42 = vperm.slane %v441_v37, %v498_v9 }
 0x25b   :  { %v501_v50 = vsel %vm500_vm13, %v499_v42, %v497_v48 }
 0x25c   :  { %v505_v54 = vsel %vm504_vm14, %v503_v52, %v501_v50 }
 0x268   :  { %v447_v45 = vpop.permute.xlu1 %446 }
 0x269   :  { %v507_v51 = vperm.slane %v447_v45, %v506_v43 }
 0x26b   :  { %v509_v56 = vsel %vm508_vm15, %v507_v51, %v505_v54 }
 0x270   :  { %v450_v53 = vpop.permute.xlu0 %449 }
 0x271   :  { %v511_v55 = vperm.slane %v450_v53, %v510_v49 }
 0x273   :  { %v513_v57 = vsel %vm512_vm0, %v511_v55, %v509_v56 }
 0x274   :  { %515 = vst [vmem:[#allocation2] sm:$0x1] %v513_v57 }
 0x275   :  { %526 = dma.vmem_to_hbm [thread:$0]  %s522_s9, 16, %s524_s12, [#allocation3]  }
 0x276   :  { %602 = dma.done.wait [#allocation3], 16  }
 0x277   :  { %603 = vsyncadd [#allocation3], 4294967280 }
 0x278   :  { %531 = vsyncpa [#allocation3], 1 }

</bundles_post_ra>
